<compile_context>
chip_gen: v6e
topology: v6e:2x2x1
jax: 0.10.0
libtpu: 0.0.40
codegen_flags: <defaults>
</compile_context>

<pallas_src>
import jax
import jax.numpy as jnp
from jax.experimental import pallas as pl
from jax.experimental.pallas import tpu as pltpu


def _round_up(x, m):
    return ((x + m - 1) // m) * m


def proj_kernel(x_ref, w_ref, b_ref, o_ref, acc_ref):
    # x_ref: (bm, bk)   w_ref: (bk, Dout_p)   b_ref: (1, Dout_p)
    # o_ref: (bm, Dout_p)   acc_ref: (bm, Dout_p) f32 scratch
    k = pl.program_id(1)

    @pl.when(k == 0)
    def _():
        acc_ref[...] = jnp.zeros_like(acc_ref)

    # MXU matmul, f32 accumulation; inputs left in their native dtype.
    acc_ref[...] += jnp.dot(x_ref[...], w_ref[...],
                            preferred_element_type=jnp.float32)

    @pl.when(k == pl.num_programs(1) - 1)
    def _():
        # Single epilogue pass: bias add + L2 normalize over dim=1.
        y = acc_ref[...] + b_ref[...].astype(jnp.float32)
        sq = jnp.sum(y * y, axis=1, keepdims=True)
        # 1 / max(||row||_2, 1e-12)  (rsqrt on EUP, multiply instead of divide).
        inv = jax.lax.rsqrt(jnp.maximum(sq, 1e-24))
        o_ref[...] = (y * inv).astype(o_ref.dtype)


def proj_forward(x, weight, bias, *, block_m=256, block_k=512):
    """x: (B, Din), weight: (Dout, Din) PyTorch-style, bias: (Dout,) -> (B, Dout)."""
    B, Din = x.shape
    Dout, Din_w = weight.shape
    assert Din_w == Din

    # Lane-dense padding of the contraction / output feature dims.
    Dout_p = _round_up(Dout, 128)
    Din_p128 = _round_up(Din, 128)
    if Din_p128 <= block_k:
        bk = Din_p128
        Din_p = Din_p128
    else:
        bk = block_k
        Din_p = _round_up(Din, block_k)

    # Batch tile: multiple of 8 sublanes, capped at block_m; pad B to a multiple.
    bm = min(block_m, _round_up(B, 8))
    B_p = _round_up(B, bm)

    # Pre-transpose weight once to (Din, Dout); zero-pad so padded lanes / K
    # rows contribute exactly 0 to the matmul and to the row norms.
    w_t = jnp.zeros((Din_p, Dout_p), dtype=weight.dtype).at[:Din, :Dout].set(weight.T)
    b_p = jnp.zeros((1, Dout_p), dtype=bias.dtype).at[0, :Dout].set(bias)
    x_p = jnp.zeros((B_p, Din_p), dtype=x.dtype).at[:B, :Din].set(x)

    grid = (B_p // bm, Din_p // bk)   # reduction (K) axis last

    out = pl.pallas_call(
        proj_kernel,
        out_shape=jax.ShapeDtypeStruct((B_p, Dout_p), x.dtype),
        grid_spec=pltpu.PrefetchScalarGridSpec(
            num_scalar_prefetch=0,
            grid=grid,
            in_specs=[
                pl.BlockSpec((bm, bk), lambda i, k: (i, k)),       # x tile
                pl.BlockSpec((bk, Dout_p), lambda i, k: (k, 0)),   # weight K-tile
                pl.BlockSpec((1, Dout_p), lambda i, k: (0, 0)),    # bias
            ],
            out_specs=pl.BlockSpec((bm, Dout_p), lambda i, k: (i, 0)),
            scratch_shapes=[pltpu.VMEM((bm, Dout_p), jnp.float32)],
        ),
        compiler_params=pltpu.CompilerParams(
            dimension_semantics=("parallel", "arbitrary"),
            vmem_limit_bytes=64 * 1024 * 1024,
        ),
    )(x_p, w_t, b_p)

    return out[:B, :Dout]


if __name__ == "__main__":
    # Small shapes consistent with Proj(input_dim, output_dim) on 2D input.
    batch, input_dim, output_dim = 8, 32, 32

    key = jax.random.PRNGKey(0)
    kx, kw, kb = jax.random.split(key, 3)

    # Deterministic synthetic parameters (matching nn.Linear shapes).
    bound = 1.0 / (input_dim ** 0.5)
    weight = jax.random.uniform(kw, (output_dim, input_dim),
                                minval=-bound, maxval=bound, dtype=jnp.float32)
    bias = jax.random.uniform(kb, (output_dim,),
                              minval=-bound, maxval=bound, dtype=jnp.float32)
    x = jax.random.normal(kx, (batch, input_dim), dtype=jnp.float32)

    out = proj_forward(x, weight, bias)
    out = jax.block_until_ready(out)

    # Reference check in plain JAX (same semantics as the PyTorch module).
    y_ref = x @ weight.T + bias
    denom = jnp.maximum(jnp.linalg.norm(y_ref, axis=1, keepdims=True), 1e-12)
    y_ref = y_ref / denom
    assert jnp.allclose(out, y_ref, atol=1e-5, rtol=1e-5), "mismatch vs reference"

    print("KERNEL_OK")
</pallas_src>

<mosaic_0001>
module attributes {stable_mosaic.version = 11 : i64} {
  func.func @proj_kernel(%arg0: i32, %arg1: i32, %arg2: memref<8x128xf32, #tpu.memory_space<vmem>>, %arg3: memref<128x128xf32, #tpu.memory_space<vmem>>, %arg4: memref<1x128xf32, #tpu.memory_space<vmem>>, %arg5: memref<8x128xf32, #tpu.memory_space<vmem>>, %arg6: memref<8x128xf32, #tpu.memory_space<vmem>>) attributes {dimension_semantics = [#tpu.dimension_semantics<parallel>, #tpu.dimension_semantics<arbitrary>], iteration_bounds = array<i64: 1, 1>, scalar_prefetch = 0 : i64, scratch_operands = 1 : i64, tpu.core_type = #tpu.core_type<tc>, window_params = [{transform_indices = @transform_0, window_bounds = array<i64: 8, 128>}, {transform_indices = @transform_1, window_bounds = array<i64: 128, 128>}, {pipeline_mode = #tpu.pipeline_mode<synchronous>, transform_indices = @transform_2, window_bounds = array<i64: 1, 128>}, {transform_indices = @transform_3, window_bounds = array<i64: 8, 128>}]} {
    %c0_i32 = arith.constant 0 : i32
    %0 = arith.cmpi eq, %arg1, %c0_i32 : i32
    %1 = arith.extui %0 : i1 to i32
    %c0_i32_0 = arith.constant 0 : i32
    %2 = arith.cmpi ne, %1, %c0_i32_0 : i32
    scf.if %2 {
      %cst_10 = arith.constant 0.000000e+00 : f32
      %12 = vector.broadcast %cst_10 : f32 to vector<8x128xf32>
      %c0_11 = arith.constant 0 : index
      %c0_12 = arith.constant 0 : index
      %13 = vector.load %arg6[%c0_11, %c0_12] : memref<8x128xf32, #tpu.memory_space<vmem>>, vector<8x128xf32>
      tpu.vector_store %arg6[%c0_11, %c0_12], %12 {strides = array<i32>} : memref<8x128xf32, #tpu.memory_space<vmem>>, vector<8x128xf32>,
    } else {
    }
    %c0 = arith.constant 0 : index
    %c0_1 = arith.constant 0 : index
    %3 = vector.load %arg6[%c0, %c0_1] : memref<8x128xf32, #tpu.memory_space<vmem>>, vector<8x128xf32>
    %c0_2 = arith.constant 0 : index
    %c0_3 = arith.constant 0 : index
    %4 = vector.load %arg2[%c0_2, %c0_3] : memref<8x128xf32, #tpu.memory_space<vmem>>, vector<8x128xf32>
    %c0_4 = arith.constant 0 : index
    %c0_5 = arith.constant 0 : index
    %5 = vector.load %arg3[%c0_4, %c0_5] : memref<128x128xf32, #tpu.memory_space<vmem>>, vector<128x128xf32>
    %cst = arith.constant dense<0.000000e+00> : vector<8x128xf32>
    %6 = tpu.matmul %4, %5, %cst {dimension_numbers = #tpu.dot_dimension_numbers<[1], [0], [0], [1], [0, 0, 1, 1], [], []>} : vector<8x128xf32>, vector<128x128xf32>, vector<8x128xf32> -> vector<8x128xf32>
    %7 = arith.addf %3, %6 : vector<8x128xf32>
    %c0_6 = arith.constant 0 : index
    %c0_7 = arith.constant 0 : index
    %8 = vector.load %arg6[%c0_6, %c0_7] : memref<8x128xf32, #tpu.memory_space<vmem>>, vector<8x128xf32>
    tpu.vector_store %arg6[%c0_6, %c0_7], %7 {strides = array<i32>} : memref<8x128xf32, #tpu.memory_space<vmem>>, vector<8x128xf32>,
    %c0_i32_8 = arith.constant 0 : i32
    %9 = arith.cmpi eq, %arg1, %c0_i32_8 : i32
    %10 = arith.extui %9 : i1 to i32
    %c0_i32_9 = arith.constant 0 : i32
    %11 = arith.cmpi ne, %10, %c0_i32_9 : i32
    scf.if %11 {
      %c0_10 = arith.constant 0 : index
      %c0_11 = arith.constant 0 : index
      %12 = vector.load %arg6[%c0_10, %c0_11] : memref<8x128xf32, #tpu.memory_space<vmem>>, vector<8x128xf32>
      %c0_12 = arith.constant 0 : index
      %c0_13 = arith.constant 0 : index
      %13 = vector.load %arg4[%c0_12, %c0_13] : memref<1x128xf32, #tpu.memory_space<vmem>>, vector<1x128xf32>
      %14 = vector.broadcast %13 : vector<1x128xf32> to vector<8x128xf32>
      %15 = arith.addf %12, %14 : vector<8x128xf32>
      %16 = arith.mulf %15, %15 : vector<8x128xf32>
      %cst_14 = arith.constant dense<0.000000e+00> : vector<8xf32>
      %17 = vector.multi_reduction <add>, %16, %cst_14 [1] : vector<8x128xf32> to vector<8xf32>
      %18 = vector.shape_cast %17 : vector<8xf32> to vector<8x1xf32>
      %cst_15 = arith.constant 1.000000e-24 : f32
      %19 = vector.broadcast %cst_15 : f32 to vector<8x1xf32>
      %20 = arith.maximumf %18, %19 : vector<8x1xf32>
      %21 = math.rsqrt %20 : vector<8x1xf32>
      %22 = vector.broadcast %21 : vector<8x1xf32> to vector<8x128xf32>
      %23 = arith.mulf %15, %22 : vector<8x128xf32>
      %c0_16 = arith.constant 0 : index
      %c0_17 = arith.constant 0 : index
      %24 = vector.load %arg5[%c0_16, %c0_17] : memref<8x128xf32, #tpu.memory_space<vmem>>, vector<8x128xf32>
      tpu.vector_store %arg5[%c0_16, %c0_17], %23 {strides = array<i32>} : memref<8x128xf32, #tpu.memory_space<vmem>>, vector<8x128xf32>,
    } else {
    }
    return
  }
  func.func @transform_0(%arg0: i32, %arg1: i32) -> (i32, i32) {
    %c0_i32 = arith.constant 0 : i32
    return %arg0, %arg1 : i32, i32
  }
  func.func @transform_1(%arg0: i32, %arg1: i32) -> (i32, i32) {
    %c0_i32 = arith.constant 0 : i32
    %c0_i32_0 = arith.constant 0 : i32
    return %arg1, %c0_i32 : i32, i32
  }
  func.func @transform_2(%arg0: i32, %arg1: i32) -> (i32, i32) {
    %c0_i32 = arith.constant 0 : i32
    %c0_i32_0 = arith.constant 0 : i32
    %c0_i32_1 = arith.constant 0 : i32
    return %c0_i32, %c0_i32_0 : i32, i32
  }
  func.func @transform_3(%arg0: i32, %arg1: i32) -> (i32, i32) {
    %c0_i32 = arith.constant 0 : i32
    %c0_i32_0 = arith.constant 0 : i32
    return %arg0, %c0_i32 : i32, i32
  }
}

</mosaic_0001>

<bundles_post_ra>
// kernel: tpu_custom_call.1
= control target key start
LH: loop header
LB: loop body
LE: loop exit
PB: predicated region body
PF: predicated region fallthrough
CT: control target
= control target key end

     0   :  { %8 = vsyncpa [#allocation4], 0  ;;  %s338_s0 = inlined_call_operand.hbm [shape: f32[8,128], index: 0, kind: input, shape index: {}]   ;;  %s339_s1 = inlined_call_operand.hbm [shape: f32[128,128], index: 1, kind: input, shape index: {}]   ;;  %s340_s2 = inlined_call_operand.vmem [shape: f32[1,128], index: 2, kind: input, shape index: {}]   ;;  %s341_s3 = inlined_call_operand.hbm [shape: f32[8,128], index: 3, kind: output, shape index: {}]  }
   0x1   :  { %9 = vsyncpa [#allocation7], 0 }
   0x2   :  { %10 = vsyncpa [#allocation5], 0  ;;  %s299_s12 = smov [#allocation3]   ;;  %s300_s14 = smov [#allocation6]  }
   0x3   :  { %s17_s13 = sshll.u32 %s299_s12, 4  ;;  %s26_s15 = sshll.u32 %s300_s14, 4  ;;  %s18_s13 = int_to_ptr.vmem [resolvable:$true] %s17_s13  ;;  %s27_s15 = int_to_ptr.vmem [resolvable:$true] %s26_s15 }
   0x4   :  { %s241_s16 = scalar_lea.vmem %s18_s13, 128  ;;  %p246_p1 = scmp.lt.s32.totalorder %s18_s13, %s18_s13 }
   0x5   :  { %p242_p0 = scmp.ne.s32.totalorder %s18_s13, %s241_s16  ;;  %p247_p2 = scmp.lt.s32.totalorder %s241_s16, %s241_s16 }
   0x7   :  { %p248_p3 = por %p247_p2, %p246_p1 }
   0x9   :  { %p249_p4 = pnand %p248_p3, %p242_p0 }
   0xb   :  { %252 = shalt.err (!%p249_p4)
}
   0xc   :  { %20 = dma.hbm_to_vmem [thread:$0]  %s338_s0, 128, %s18_s13, [#allocation4]  }
   0xd   :  { %s261_s19 = scalar_lea.vmem %s27_s15, 2048  ;;  %p266_p6 = scmp.lt.s32.totalorder %s27_s15, %s27_s15 }
   0xe   :  { %p262_p5 = scmp.ne.s32.totalorder %s27_s15, %s261_s19  ;;  %p267_p7 = scmp.lt.s32.totalorder %s261_s19, %s261_s19 }
  0x10   :  { %p268_p8 = por %p267_p7, %p266_p6 }
  0x12   :  { %p269_p9 = pnand %p268_p8, %p262_p5 }
  0x14   :  { %272 = shalt.err (!%p269_p9)
}
  0x15   :  { %s301_s20 = smov 128   ;;  %s302_s21 = smov 8  }
  0x16   :  { %32 = dma.hbm_to_vmem [thread:$0]  %s339_s1, 2048, %s27_s15, [#allocation7], %s301_s20, %s301_s20, %s302_s21  }
  0x17   :  { %293 = dma.done.wait [#allocation4], 128  }
  0x18   :  { %294 = vsyncadd [#allocation4], 4294967168 }
  0x19   :  { %295 = dma.done.wait [#allocation7], 2048  }
  0x1a   :  { %296 = vsyncadd [#allocation7], 4294965248  ;;  %v303_v0 = vmov 0.0   ;;  %vm304_vm0 = vmmov 0   ;;  %v63_v1 = vld [vmem:[#allocation6 + $0x78] sm:$0xff]  ;;  %v62_v2 = vld [vmem:[#allocation6 + $0x70] sm:$0xff] }
  0x1b   :  { %189 = vmatprep.subr.mxu0 %v303_v0  ;;  %221 = vmatprep.mubr.msk.f32.mxu0 %vm304_vm0, %v303_v0  ;;  %v61_v3 = vld [vmem:[#allocation6 + $0x68] sm:$0xff]  ;;  %v60_v4 = vld [vmem:[#allocation6 + $0x60] sm:$0xff]  ;;  %v59_v5 = vld [vmem:[#allocation6 + $0x58] sm:$0xff]  ;;  %s305_s24 = smov [#allocation8]  }
  0x1c   :  { %190 = vmatpush3.msra.mxu0 %v63_v1  ;;  %v58_v6 = vld [vmem:[#allocation6 + $0x50] sm:$0xff]  ;;  %v57_v7 = vld [vmem:[#allocation6 + $0x48] sm:$0xff]  ;;  %v56_v8 = vld [vmem:[#allocation6 + $0x40] sm:$0xff]  ;;  %s161_s25 = sshll.u32 %s305_s24, 4  ;;  %s162_s25 = int_to_ptr.vmem [resolvable:$true] %s161_s25 }
  0x1d   :  { %191 = vmatprep.subr.mxu0 %v303_v0  ;;  %v55_v9 = vld [vmem:[#allocation6 + $0x38] sm:$0xff]  ;;  %v54_v10 = vld [vmem:[#allocation6 + $0x30] sm:$0xff]  ;;  %v53_v11 = vld [vmem:[#allocation6 + $0x28] sm:$0xff]  ;;  %s273_s26 = scalar_lea.vmem %s162_s25, 128  ;;  %p278_p11 = scmp.lt.s32.totalorder %s162_s25, %s162_s25 }
  0x1e   :  { %192 = vmatpush3.msra.mxu0 %v62_v2  ;;  %v52_v12 = vld [vmem:[#allocation6 + $0x20] sm:$0xff]  ;;  %v51_v13 = vld [vmem:[#allocation6 + $0x18] sm:$0xff]  ;;  %v50_v14 = vld [vmem:[#allocation6 + $0x10] sm:$0xff]  ;;  %p274_p10 = scmp.ne.s32.totalorder %s162_s25, %s273_s26  ;;  %p279_p12 = scmp.lt.s32.totalorder %s273_s26, %s273_s26 }
  0x1f   :  { %193 = vmatprep.subr.mxu0 %v303_v0  ;;  %v49_v15 = vld [vmem:[#allocation6 + $0x8] sm:$0xff]  ;;  %v48_v16 = vld [vmem:[#allocation6] sm:$0xff]  ;;  %v47_v17 = vld [vmem:[#allocation3] sm:$0xff] }
  0x20   :  { %194 = vmatpush3.msra.mxu0 %v61_v3  ;;  %v171_v18 = vld [vmem:[%s340_s2] ss:$0 sm:$0xff]  ;;  %p280_p13 = por %p279_p12, %p278_p11 }
  0x21   :  { %195 = vmatprep.subr.mxu0 %v303_v0 }
  0x22   :  { %196 = vmatpush3.msra.mxu0 %v60_v4  ;;  %p281_p0 = pnand %p280_p13, %p274_p10 }
  0x23   :  { %197 = vmatprep.subr.mxu0 %v303_v0 }
  0x24   :  { %198 = vmatpush3.msra.mxu0 %v59_v5 }
  0x25   :  { %199 = vmatprep.subr.mxu0 %v303_v0 }
  0x26   :  { %200 = vmatpush3.msra.mxu0 %v58_v6 }
  0x27   :  { %201 = vmatprep.subr.mxu0 %v303_v0 }
  0x28   :  { %202 = vmatpush3.msra.mxu0 %v57_v7 }
  0x29   :  { %203 = vmatprep.subr.mxu0 %v303_v0 }
  0x2a   :  { %204 = vmatpush3.msra.mxu0 %v56_v8 }
  0x2b   :  { %205 = vmatprep.subr.mxu0 %v303_v0 }
  0x2c   :  { %206 = vmatpush3.msra.mxu0 %v55_v9 }
  0x2d   :  { %207 = vmatprep.subr.mxu0 %v303_v0 }
  0x2e   :  { %208 = vmatpush3.msra.mxu0 %v54_v10 }
  0x2f   :  { %209 = vmatprep.subr.mxu0 %v303_v0 }
  0x30   :  { %210 = vmatpush3.msra.mxu0 %v53_v11 }
  0x31   :  { %211 = vmatprep.subr.mxu0 %v303_v0 }
  0x32   :  { %212 = vmatpush3.msra.mxu0 %v52_v12 }
  0x33   :  { %213 = vmatprep.subr.mxu0 %v303_v0 }
  0x34   :  { %214 = vmatpush3.msra.mxu0 %v51_v13 }
  0x35   :  { %215 = vmatprep.subr.mxu0 %v303_v0 }
  0x36   :  { %216 = vmatpush3.msra.mxu0 %v50_v14 }
  0x37   :  { %217 = vmatprep.subr.mxu0 %v303_v0 }
  0x38   :  { %218 = vmatpush3.msra.mxu0 %v49_v15 }
  0x39   :  { %219 = vmatprep.subr.mxu0 %v303_v0 }
  0x3a   :  { %220 = vmatpush3.msra.mxu0 %v48_v16 }
  0x3b   :  { %222 = vmatmul.mubr.f32.vlgmr.msra.gmra.mxu0 %v47_v17 }
  0xfb   :  { %v130_v19 = vpop.f32.mrf.mxu0 }
  0xfc   :  { %v147_v20 = vadd.f32 %v171_v18, %v130_v19 }
  0xfd   :  { %v223_v21 = vpop.f32.mrf.mxu0 }
  0xfe   :  { %v148_v22 = vmul.f32 %v147_v20, %v147_v20 }
 0x100   :  { %149 = vadd.xlane.f32.xlu0 %v148_v22 }
 0x189   :  { %v150_v23 = vpop.xlane.xlu0 %149 }
 0x18a   :  { %v151_v24 = vmax.f32 %v150_v23, 1e-24 }
 0x18c   :  { %231 = vrsqrt.f32 %v151_v24 }
 0x199   :  { %v232_v25 = vpop.eup %231 }
 0x19a   :  { %v153_v26 = vmul.f32 %v232_v25, %v147_v20 }
 0x19c   :  { %154 = vst [vmem:[#allocation8] sm:$0xff] %v153_v26 }
 0x19d   :  { %284 = shalt.err (!%p281_p0)
}
 0x19e   :  { %164 = dma.vmem_to_hbm [thread:$0]  %s162_s25, 128, %s341_s3, [#allocation5]  }
 0x19f   :  { %297 = dma.done.wait [#allocation5], 128  }
 0x1a0   :  { %298 = vsyncadd [#allocation5], 4294967168 }
 0x1a1   :  { %168 = vsyncpa [#allocation4], 1 }
 0x1a2   :  { %169 = vsyncpa [#allocation7], 1 }
 0x1a3   :  { %170 = vsyncpa [#allocation5], 1 }

</bundles_post_ra>
